<compile_context>
chip_gen: v7x
topology: tpu7x:2x2x1
jax: 0.10.0
libtpu: 0.0.40
codegen_flags: <defaults>
</compile_context>

<pallas_src>
import jax
import jax.numpy as jnp
from jax.experimental import pallas as pl
from jax.experimental.pallas import tpu as pltpu


def _projector_kernel(x_ref, w_ref, b_ref, o_ref):
    # x_ref: (tm, K)  w_ref: (K, N)  b_ref: (1, N) f32  o_ref: (tm, N)
    acc = jnp.dot(x_ref[...], w_ref[...], preferred_element_type=jnp.float32)
    o_ref[...] = (acc + b_ref[...]).astype(o_ref.dtype)


def _round_up(x, m):
    return ((x + m - 1) // m) * m


def paligemma_multimodal_projector(image_features, weight_kn, bias, *,
                                   tm=256, compute_dtype=None):
    """image_features: [B, S, K]; weight_kn: [K, N] (pre-transposed); bias: [N]."""
    B, S, K = image_features.shape
    Kw, N = weight_kn.shape
    assert Kw == K, "weight must be pre-transposed to [K, N]"
    M = B * S
    out_dtype = image_features.dtype

    # Optional low-precision compute path (f32 accumulation kept inside kernel).
    if compute_dtype is not None:
        x = image_features.astype(compute_dtype)
        w = weight_kn.astype(compute_dtype)
    else:
        x = image_features
        w = weight_kn

    itemsize = jnp.dtype(x.dtype).itemsize
    sublane = 16 if itemsize == 2 else 8          # bf16 packs 2 rows per sublane

    # Row-tile: big (MXU occupancy), sublane-aligned, never bigger than needed.
    tm = _round_up(min(tm, _round_up(M, sublane)), sublane)
    M_pad = _round_up(M, tm)

    x2d = x.reshape(M, K)
    if M_pad != M:
        x2d = jnp.pad(x2d, ((0, M_pad - M), (0, 0)))   # padded rows sliced off below

    b2d = bias.astype(jnp.float32).reshape(1, N)

    grid = (M_pad // tm,)

    # Explicit VMEM budget: resident weight/bias (+pipeline copy) and
    # double-buffered x/out tiles, with headroom; clamp for v7x (64 MiB phys).
    w_bytes = K * N * jnp.dtype(w.dtype).itemsize
    x_tile = tm * K * itemsize
    o_tile = tm * N * jnp.dtype(out_dtype).itemsize
    b_bytes = N * 4
    vmem_needed = 2 * (w_bytes + x_tile + o_tile + b_bytes) + (2 << 20)
    vmem_limit = int(min(max(vmem_needed, 32 << 20), 60 << 20))

    cost = pl.CostEstimate(
        flops=2 * M_pad * K * N,
        transcendentals=0,
        bytes_accessed=(M_pad * K * itemsize + w_bytes + b_bytes
                        + M_pad * N * jnp.dtype(out_dtype).itemsize),
    )

    out2d = pl.pallas_call(
        _projector_kernel,
        out_shape=jax.ShapeDtypeStruct((M_pad, N), out_dtype),
        grid_spec=pltpu.PrefetchScalarGridSpec(
            num_scalar_prefetch=0,
            grid=grid,
            in_specs=[
                pl.BlockSpec((tm, K), lambda i: (i, 0)),   # activation row tile
                pl.BlockSpec((K, N), lambda i: (0, 0)),    # weight: resident, one DMA
                pl.BlockSpec((1, N), lambda i: (0, 0)),    # bias: resident, one DMA
            ],
            out_specs=pl.BlockSpec((tm, N), lambda i: (i, 0)),  # lane-dense output slab
        ),
        compiler_params=pltpu.CompilerParams(
            dimension_semantics=("parallel",),   # M tiles shard across TCs (v7x megacore)
            vmem_limit_bytes=vmem_limit,
        ),
        cost_estimate=cost,
    )(x2d, w, b2d)

    if M_pad != M:
        out2d = out2d[:M]
    return out2d.reshape(B, S, N)


if __name__ == "__main__":
    # Small synthetic config consistent with the module:
    #   vision_config.hidden_size = 128, vision_config.projection_dim = 256
    #   num_image_tokens = 16, batch = 2
    B, S, K, N = 2, 16, 128, 256

    key = jax.random.PRNGKey(0)
    k_x, k_w, k_b = jax.random.split(key, 3)

    image_features = jax.random.normal(k_x, (B, S, K), dtype=jnp.float32)
    # torch nn.Linear layout: weight [out, in], bias [out]
    weight = jax.random.normal(k_w, (N, K), dtype=jnp.float32) * (1.0 / K ** 0.5)
    bias = jax.random.normal(k_b, (N,), dtype=jnp.float32) * 0.01

    # Pre-transpose ONCE at "init" time (not on the per-call hot path).
    weight_kn = jnp.asarray(weight.T)   # [K, N]

    out = paligemma_multimodal_projector(image_features, weight_kn, bias)
    out = jax.block_until_ready(out)

    # Reference check against plain JAX (same math as torch nn.Linear).
    ref = image_features @ weight.T + bias
    assert out.shape == (B, S, N)
    assert jnp.allclose(out, ref, atol=1e-4, rtol=1e-4), "mismatch vs reference"

    print("KERNEL_OK")
</pallas_src>

<mosaic_0001>
module attributes {stable_mosaic.version = 11 : i64} {
  func.func @_projector_kernel(%arg0: i32, %arg1: memref<32x128xf32, #tpu.memory_space<vmem>>, %arg2: memref<128x256xf32, #tpu.memory_space<vmem>>, %arg3: memref<1x256xf32, #tpu.memory_space<vmem>>, %arg4: memref<32x256xf32, #tpu.memory_space<vmem>>) attributes {dimension_semantics = [#tpu.dimension_semantics<parallel>], iteration_bounds = array<i64: 1>, scalar_prefetch = 0 : i64, scratch_operands = 0 : i64, tpu.core_type = #tpu.core_type<tc>, window_params = [{transform_indices = @transform_0, window_bounds = array<i64: 32, 128>}, {pipeline_mode = #tpu.pipeline_mode<synchronous>, transform_indices = @transform_1, window_bounds = array<i64: 128, 256>}, {pipeline_mode = #tpu.pipeline_mode<synchronous>, transform_indices = @transform_2, window_bounds = array<i64: 1, 256>}, {transform_indices = @transform_3, window_bounds = array<i64: 32, 256>}]} {
    %c0 = arith.constant 0 : index
    %c0_0 = arith.constant 0 : index
    %0 = vector.load %arg1[%c0, %c0_0] : memref<32x128xf32, #tpu.memory_space<vmem>>, vector<32x128xf32>
    %c0_1 = arith.constant 0 : index
    %c0_2 = arith.constant 0 : index
    %1 = vector.load %arg2[%c0_1, %c0_2] : memref<128x256xf32, #tpu.memory_space<vmem>>, vector<128x256xf32>
    %cst = arith.constant dense<0.000000e+00> : vector<32x256xf32>
    %2 = tpu.matmul %0, %1, %cst {dimension_numbers = #tpu.dot_dimension_numbers<[1], [0], [0], [1], [0, 0, 1, 1], [], []>} : vector<32x128xf32>, vector<128x256xf32>, vector<32x256xf32> -> vector<32x256xf32>
    %c0_3 = arith.constant 0 : index
    %c0_4 = arith.constant 0 : index
    %3 = vector.load %arg3[%c0_3, %c0_4] : memref<1x256xf32, #tpu.memory_space<vmem>>, vector<1x256xf32>
    %4 = vector.broadcast %3 : vector<1x256xf32> to vector<32x256xf32>
    %5 = arith.addf %2, %4 : vector<32x256xf32>
    %c0_5 = arith.constant 0 : index
    %c0_6 = arith.constant 0 : index
    %6 = vector.load %arg4[%c0_5, %c0_6] : memref<32x256xf32, #tpu.memory_space<vmem>>, vector<32x256xf32>
    tpu.vector_store %arg4[%c0_5, %c0_6], %5 {strides = array<i32>} : memref<32x256xf32, #tpu.memory_space<vmem>>, vector<32x256xf32>,
    return
  }
  func.func @transform_0(%arg0: i32) -> (i32, i32) {
    %c0_i32 = arith.constant 0 : i32
    %c0_i32_0 = arith.constant 0 : i32
    return %arg0, %c0_i32 : i32, i32
  }
  func.func @transform_1(%arg0: i32) -> (i32, i32) {
    %c0_i32 = arith.constant 0 : i32
    %c0_i32_0 = arith.constant 0 : i32
    %c0_i32_1 = arith.constant 0 : i32
    return %c0_i32, %c0_i32_0 : i32, i32
  }
  func.func @transform_2(%arg0: i32) -> (i32, i32) {
    %c0_i32 = arith.constant 0 : i32
    %c0_i32_0 = arith.constant 0 : i32
    %c0_i32_1 = arith.constant 0 : i32
    return %c0_i32, %c0_i32_0 : i32, i32
  }
  func.func @transform_3(%arg0: i32) -> (i32, i32) {
    %c0_i32 = arith.constant 0 : i32
    %c0_i32_0 = arith.constant 0 : i32
    return %arg0, %c0_i32 : i32, i32
  }
}

</mosaic_0001>

<bundles_post_ra>
// kernel: tpu_custom_call.1
= control target key start
LH: loop header
LB: loop body
LE: loop exit
PB: predicated region body
PF: predicated region fallthrough
CT: control target
= control target key end

     0   :  { %8 = vsyncpa [#allocation3], 0  ;;  %s411_s0 = inlined_call_operand.hbm [shape: f32[32,128], index: 0, kind: input, shape index: {}]   ;;  %s412_s1 = inlined_call_operand.hbm [shape: f32[128,256], index: 1, kind: input, shape index: {}]   ;;  %s413_s2 = inlined_call_operand.vmem [shape: f32[1,256], index: 2, kind: input, shape index: {}]   ;;  %s414_s3 = inlined_call_operand.hbm [shape: f32[32,256], index: 3, kind: output, shape index: {}]  }
   0x1   :  { %9 = vsyncpa [#allocation6], 0 }
   0x2   :  { %10 = vsyncpa [#allocation4], 0  ;;  %s334_s12 = smov [#allocation2]   ;;  %s262_s16 = scalar_lea.hbm %s411_s0, 512 }
   0x3   :  { %s16_s13 = sshll.u32 %s334_s12, 4  ;;  %p263_p0 = scmp.ne.s32.totalorder %s411_s0, %s262_s16  ;;  %s17_s13 = int_to_ptr.vmem [resolvable:$true] %s16_s13 }
   0x4   :  { %p266_p1 = scmp.lt.u32.totalorder %s262_s16, %s411_s0 }
   0x6   :  { %p268_p2 = pnand %p266_p1, %p263_p0 }
   0x8   :  { %271 = shalt.err (!%p268_p2)
}
   0x9   :  { %s272_s21 = scalar_lea.vmem %s17_s13, 512  ;;  %p277_p4 = scmp.lt.s32.totalorder %s17_s13, %s17_s13 }
   0xa   :  { %p273_p3 = scmp.ne.s32.totalorder %s17_s13, %s272_s21  ;;  %p278_p5 = scmp.lt.s32.totalorder %s272_s21, %s272_s21 }
   0xc   :  { %p279_p6 = por %p278_p5, %p277_p4 }
   0xe   :  { %p280_p7 = pnand %p279_p6, %p273_p3 }
  0x10   :  { %283 = shalt.err (!%p280_p7)
}
  0x11   :  { %s335_s22 = smov 128   ;;  %s336_s23 = smov 8  }
  0x12   :  { %22 = dma.hbm_to_vmem [thread:$0]  %s411_s0, 512, %s17_s13, [#allocation3], %s335_s22, %s335_s22, %s336_s23  }
  0x13   :  { %s337_s26 = smov [#allocation5]   ;;  %s284_s30 = scalar_lea.hbm %s412_s1, 4096 }
  0x14   :  { %s28_s27 = sshll.u32 %s337_s26, 4  ;;  %p285_p8 = scmp.ne.s32.totalorder %s412_s1, %s284_s30  ;;  %s29_s27 = int_to_ptr.vmem [resolvable:$true] %s28_s27 }
  0x15   :  { %p288_p9 = scmp.lt.u32.totalorder %s284_s30, %s412_s1 }
  0x17   :  { %p290_p10 = pnand %p288_p9, %p285_p8 }
  0x19   :  { %293 = shalt.err (!%p290_p10)
}
  0x1a   :  { %s294_s8 = scalar_lea.vmem %s29_s27, 4096  ;;  %p299_p12 = scmp.lt.s32.totalorder %s29_s27, %s29_s27 }
  0x1b   :  { %p295_p11 = scmp.ne.s32.totalorder %s29_s27, %s294_s8  ;;  %p300_p13 = scmp.lt.s32.totalorder %s294_s8, %s294_s8 }
  0x1d   :  { %p301_p0 = por %p300_p13, %p299_p12 }
  0x1f   :  { %p302_p1 = pnand %p301_p0, %p295_p11 }
  0x21   :  { %305 = shalt.err (!%p302_p1)
}
  0x22   :  { %s338_s0 = smov 256   ;;  %s339_s9 = smov 16  }
  0x23   :  { %34 = dma.hbm_to_vmem [thread:$0]  %s412_s1, 4096, %s29_s27, [#allocation6], %s338_s0, %s338_s0, %s339_s9  }
  0x24   :  { %328 = dma.done.wait [#allocation3], 512  }
  0x25   :  { %329 = vsyncadd [#allocation3], 4294966784 }
  0x26   :  { %330 = dma.done.wait [#allocation6], 4096  }
  0x27   :  { %331 = vsyncadd [#allocation6], 4294963200  ;;  %v340_v0 = vmov 0.0   ;;  %v48_v1 = vld [vmem:[#allocation5 + $0x8] sm:$0xff]  ;;  %v50_v2 = vld [vmem:[#allocation5 + $0x18] sm:$0xff]  ;;  %v81_v53 = vlaneseq  ;;  %s341_s13 = smov [#allocation7]  }
  0x28   :  { %155 = vmatprep.mubr.f32.mxu0 %v340_v0  ;;  %167 = vmatprep.mubr.f32.mxu1 %v340_v0  ;;  %v47_v3 = vld [vmem:[#allocation5] sm:$0xff]  ;;  %v206_v4 = vpack.c.bf16 %v50_v2, %v48_v1  ;;  %v49_v5 = vld [vmem:[#allocation5 + $0x10] sm:$0xff]  ;;  %v52_v6 = vld [vmem:[#allocation5 + $0x28] sm:$0xff]  ;;  %s193_s14 = sshll.u32 %s341_s13, 4  ;;  %s194_s14 = int_to_ptr.vmem [resolvable:$true] %s193_s14 }
  0x29   :  { %v54_v7 = vld [vmem:[#allocation5 + $0x38] sm:$0xff]  ;;  %v208_v8 = vpack.c.bf16 %v49_v5, %v47_v3  ;;  %v51_v10 = vld [vmem:[#allocation5 + $0x20] sm:$0xff]  ;;  %v53_v11 = vld [vmem:[#allocation5 + $0x30] sm:$0xff]  ;;  %v82_v54 = vshrl.u32 %v81_v53, 7  ;;  %p311_p3 = scmp.lt.s32.totalorder %s194_s14, %s194_s14 }
  0x2a   :  { %v210_v9 = vpack.c.bf16 %v54_v7, %v52_v6  ;;  %v56_v12 = vld [vmem:[#allocation5 + $0x48] sm:$0xff]  ;;  %207 = vmatprep.subr.bf16.mxu0 %v206_v4  ;;  %238 = vmatprep.subr.bf16.mxu1 %v206_v4  ;;  %v58_v13 = vld [vmem:[#allocation5 + $0x58] sm:$0xff]  ;;  %v212_v14 = vpack.c.bf16 %v53_v11, %v51_v10  ;;  %v55_v16 = vld [vmem:[#allocation5 + $0x40] sm:$0xff] }
  0x2b   :  { %209 = vmatpush1.bf16.msra.mxu0 %v208_v8  ;;  %246 = vmatpush1.bf16.msra.mxu1 %v208_v8  ;;  %v214_v15 = vpack.c.bf16 %v58_v13, %v56_v12  ;;  %v57_v17 = vld [vmem:[#allocation5 + $0x50] sm:$0xff]  ;;  %v60_v18 = vld [vmem:[#allocation5 + $0x68] sm:$0xff]  ;;  %v62_v19 = vld [vmem:[#allocation5 + $0x78] sm:$0xff]  ;;  %v83_v55 = vsub.s32 0, %v82_v54  ;;  %v87_v57 = vsub.s32 1, %v82_v54 }
  0x2c   :  { %211 = vmatprep.subr.bf16.mxu0 %v210_v9  ;;  %239 = vmatprep.subr.bf16.mxu1 %v210_v9  ;;  %v216_v20 = vpack.c.bf16 %v57_v17, %v55_v16  ;;  %v218_v21 = vpack.c.bf16 %v62_v19, %v60_v18  ;;  %v59_v22 = vld [vmem:[#allocation5 + $0x60] sm:$0xff]  ;;  %v61_v23 = vld [vmem:[#allocation5 + $0x70] sm:$0xff]  ;;  %v64_v24 = vld [vmem:[#allocation5 + $0x88] sm:$0xff] }
  0x2d   :  { %v66_v25 = vld [vmem:[#allocation5 + $0x98] sm:$0xff]  ;;  %v220_v26 = vpack.c.bf16 %v61_v23, %v59_v22  ;;  %v63_v28 = vld [vmem:[#allocation5 + $0x80] sm:$0xff]  ;;  %v65_v29 = vld [vmem:[#allocation5 + $0x90] sm:$0xff] }
  0x2e   :  { %v222_v27 = vpack.c.bf16 %v66_v25, %v64_v24  ;;  %v68_v30 = vld [vmem:[#allocation5 + $0xa8] sm:$0xff]  ;;  %v70_v31 = vld [vmem:[#allocation5 + $0xb8] sm:$0xff]  ;;  %v224_v32 = vpack.c.bf16 %v65_v29, %v63_v28  ;;  %v67_v34 = vld [vmem:[#allocation5 + $0xa0] sm:$0xff] }
  0x2f   :  { %213 = vmatpush1.bf16.msra.mxu0 %v212_v14  ;;  %247 = vmatpush1.bf16.msra.mxu1 %v212_v14  ;;  %v226_v33 = vpack.c.bf16 %v70_v31, %v68_v30  ;;  %v69_v35 = vld [vmem:[#allocation5 + $0xb0] sm:$0xff]  ;;  %v72_v36 = vld [vmem:[#allocation5 + $0xc8] sm:$0xff]  ;;  %v74_v37 = vld [vmem:[#allocation5 + $0xd8] sm:$0xff] }
  0x30   :  { %215 = vmatprep.subr.bf16.mxu0 %v214_v15  ;;  %240 = vmatprep.subr.bf16.mxu1 %v214_v15  ;;  %v228_v38 = vpack.c.bf16 %v69_v35, %v67_v34  ;;  %v230_v39 = vpack.c.bf16 %v74_v37, %v72_v36  ;;  %v71_v40 = vld [vmem:[#allocation5 + $0xc0] sm:$0xff]  ;;  %v73_v41 = vld [vmem:[#allocation5 + $0xd0] sm:$0xff]  ;;  %v76_v42 = vld [vmem:[#allocation5 + $0xe8] sm:$0xff] }
  0x31   :  { %v78_v43 = vld [vmem:[#allocation5 + $0xf8] sm:$0xff]  ;;  %v232_v44 = vpack.c.bf16 %v73_v41, %v71_v40  ;;  %v75_v46 = vld [vmem:[#allocation5 + $0xe0] sm:$0xff]  ;;  %v77_v47 = vld [vmem:[#allocation5 + $0xf0] sm:$0xff] }
  0x32   :  { %v234_v45 = vpack.c.bf16 %v78_v43, %v76_v42  ;;  %v236_v48 = vpack.c.bf16 %v77_v47, %v75_v46  ;;  %v43_v49 = vld [vmem:[#allocation2] sm:$0xff]  ;;  %v45_v50 = vld [vmem:[#allocation2 + $0x10] sm:$0xff]  ;;  %v44_v51 = vld [vmem:[#allocation2 + $0x8] sm:$0xff] }
  0x33   :  { %217 = vmatpush1.bf16.msra.mxu0 %v216_v20  ;;  %248 = vmatpush1.bf16.msra.mxu1 %v216_v20  ;;  %v46_v52 = vld [vmem:[#allocation2 + $0x18] sm:$0xff]  ;;  %v79_v56 = vld [vmem:[%s413_s2] sm:$0x3]  ;;  %s306_s2 = scalar_lea.vmem %s194_s14, 1024 }
  0x34   :  { %219 = vmatprep.subr.bf16.mxu0 %v218_v21  ;;  %241 = vmatprep.subr.bf16.mxu1 %v218_v21  ;;  %v84_v58 = vrot.slane %v79_v56, %v83_v55  ;;  %v88_v59 = vrot.slane %v79_v56, %v87_v57  ;;  %p307_p2 = scmp.ne.s32.totalorder %s194_s14, %s306_s2  ;;  %p312_p4 = scmp.lt.s32.totalorder %s306_s2, %s306_s2 }
  0x36   :  { %p313_p5 = por %p312_p4, %p311_p3 }
  0x37   :  { %221 = vmatpush1.bf16.msra.mxu0 %v220_v26  ;;  %249 = vmatpush1.bf16.msra.mxu1 %v220_v26 }
  0x38   :  { %223 = vmatprep.subr.bf16.mxu0 %v222_v27  ;;  %242 = vmatprep.subr.bf16.mxu1 %v222_v27  ;;  %p314_p6 = pnand %p313_p5, %p307_p2 }
  0x3b   :  { %225 = vmatpush1.bf16.msra.mxu0 %v224_v32  ;;  %250 = vmatpush1.bf16.msra.mxu1 %v224_v32 }
  0x3c   :  { %227 = vmatprep.subr.bf16.mxu0 %v226_v33  ;;  %243 = vmatprep.subr.bf16.mxu1 %v226_v33 }
  0x3f   :  { %229 = vmatpush1.bf16.msra.mxu0 %v228_v38  ;;  %251 = vmatpush1.bf16.msra.mxu1 %v228_v38 }
  0x40   :  { %231 = vmatprep.subr.bf16.mxu0 %v230_v39  ;;  %244 = vmatprep.subr.bf16.mxu1 %v230_v39 }
  0x43   :  { %233 = vmatpush1.bf16.msra.mxu0 %v232_v44  ;;  %252 = vmatpush1.bf16.msra.mxu1 %v232_v44 }
  0x44   :  { %235 = vmatprep.subr.bf16.mxu0 %v234_v45  ;;  %245 = vmatprep.subr.bf16.mxu1 %v234_v45 }
  0x47   :  { %237 = vmatpush1.bf16.msra.mxu0 %v236_v48  ;;  %253 = vmatpush1.bf16.msra.mxu1 %v236_v48 }
  0x4a   :  { %156 = vmatmul.mubr.f32.vlgmr.msra.gmra.mrb[0].mxu0 %v43_v49  ;;  %168 = vmatmul.mubr.f32.vlgmr.msra.gmra.mrb[0].mxu1 %v45_v50 }
  0x4b   :  { %161 = vmatprep.mubr.f32.mxu0 %v340_v0  ;;  %173 = vmatprep.mubr.f32.mxu1 %v340_v0 }
  0x4e   :  { %162 = vmatmul.mubr.f32.gmra.mrb[2].mxu0 %v44_v51  ;;  %174 = vmatmul.mubr.f32.gmra.mrb[2].mxu1 %v46_v52 }
 0x11d   :  { %v157_v60 = vpop.f32.mrb[0].mxu0  ;;  %v169_v61 = vpop.f32.mrb[0].mxu1 }
 0x11e   :  { %v158_v62 = vadd.f32 %v157_v60, %v84_v58  ;;  %v170_v63 = vadd.f32 %v169_v61, %v84_v58  ;;  %v159_v1 = vpop.f32.mrb[1].mxu0  ;;  %v171_v0 = vpop.f32.mrb[1].mxu1 }
 0x11f   :  { %v160_v2 = vadd.f32 %v159_v1, %v88_v59  ;;  %v172_v3 = vadd.f32 %v171_v0, %v88_v59 }
 0x120   :  { %180 = vst [vmem:[#allocation7] sm:$0xff] %v158_v62  ;;  %184 = vst [vmem:[#allocation7 + $0x20] sm:$0xff] %v170_v63 }
 0x121   :  { %181 = vst [vmem:[#allocation7 + $0x8] sm:$0xff] %v160_v2  ;;  %185 = vst [vmem:[#allocation7 + $0x28] sm:$0xff] %v172_v3  ;;  %v163_v4 = vpop.f32.mrb[2].mxu0  ;;  %v175_v5 = vpop.f32.mrb[2].mxu1 }
 0x122   :  { %v164_v6 = vadd.f32 %v163_v4, %v84_v58  ;;  %v176_v7 = vadd.f32 %v175_v5, %v84_v58  ;;  %v165_v8 = vpop.f32.mrb[3].mxu0  ;;  %v177_v9 = vpop.f32.mrb[3].mxu1 }
 0x123   :  { %v166_v10 = vadd.f32 %v165_v8, %v88_v59  ;;  %v178_v11 = vadd.f32 %v177_v9, %v88_v59 }
 0x124   :  { %182 = vst [vmem:[#allocation7 + $0x10] sm:$0xff] %v164_v6  ;;  %186 = vst [vmem:[#allocation7 + $0x30] sm:$0xff] %v176_v7 }
 0x125   :  { %183 = vst [vmem:[#allocation7 + $0x18] sm:$0xff] %v166_v10  ;;  %187 = vst [vmem:[#allocation7 + $0x38] sm:$0xff] %v178_v11 }
 0x126   :  { %317 = shalt.err (!%p314_p6)
}
 0x127   :  { %s318_s17 = scalar_lea.hbm %s414_s3, 1024 }
 0x128   :  { %p319_p7 = scmp.ne.s32.totalorder %s414_s3, %s318_s17  ;;  %p322_p8 = scmp.lt.u32.totalorder %s318_s17, %s414_s3 }
 0x12a   :  { %p324_p9 = pnand %p322_p8, %p319_p7 }
 0x12c   :  { %327 = shalt.err (!%p324_p9)
}
 0x12d   :  { %199 = dma.vmem_to_hbm [thread:$0]  %s194_s14, 1024, %s414_s3, [#allocation4], %s338_s0, %s338_s0, %s339_s9  }
 0x12e   :  { %332 = dma.done.wait [#allocation4], 1024  }
 0x12f   :  { %333 = vsyncadd [#allocation4], 4294966272 }
 0x130   :  { %203 = vsyncpa [#allocation3], 1 }
 0x131   :  { %204 = vsyncpa [#allocation6], 1 }
 0x132   :  { %205 = vsyncpa [#allocation4], 1 }

</bundles_post_ra>
